<compile_context>
chip_gen: v5e
topology: v5e:2x2
jax: 0.10.0
libtpu: 0.0.40
codegen_flags: <defaults>
</compile_context>

<pallas_src>
import jax
import jax.numpy as jnp
from jax.experimental import pallas as pl
from jax.experimental.pallas import tpu as pltpu


def rlcar_kernel(x_ref, w1_ref, b1_ref, w2_ref, b2_ref, wo_ref, bo_ref,
                 scale_ref, off_ref, o_ref):
    x = x_ref[...]                                                    # (TB, d_in) bf16

    # fc1 + relu : bf16 x bf16 on the MXU, f32 accumulate.
    h1 = jnp.dot(x, w1_ref[...], preferred_element_type=jnp.float32) + b1_ref[...]
    h1 = jnp.maximum(h1, 0.0).astype(jnp.bfloat16)                    # (TB, 64) bf16

    # fc2 + relu : bf16 x bf16 (no f32 MXU emulation).
    h2 = jnp.dot(h1, w2_ref[...], preferred_element_type=jnp.float32) + b2_ref[...]
    h2 = jnp.maximum(h2, 0.0).astype(jnp.bfloat16)                    # (TB, 16) bf16

    # Output linear straight into the real 4 columns (sigmoid columns of
    # wo/bo were pre-scaled by 0.5 on the host).
    z = jnp.dot(h2, wo_ref[...], preferred_element_type=jnp.float32) + bo_ref[...]

    # cat(tanh(z[:, :2]) * 10, sigmoid(z_orig[:, 2:]) * 2) with one tanh/lane:
    #   2 * sigmoid(z_orig) = tanh(z_orig / 2) + 1 = tanh(z) + 1   (z pre-halved)
    #   => out = scale * tanh(z) + offset,  scale=(10,10,1,1), offset=(0,0,1,1)
    o_ref[...] = scale_ref[...] * jnp.tanh(z) + off_ref[...]


def _round_up(n, m):
    return ((n + m - 1) // m) * m


def prepare_params(params):
    """Cast weights to bf16; fold the sigmoid half-scale into wo/bo; build
    the resident epilogue scale/offset vectors."""
    w1, b1, w2, b2, wo, bo = params
    wo_f = wo.at[:, 2:].multiply(0.5)          # exact (power-of-two) scaling
    bo_f = bo.at[:, 2:].multiply(0.5)
    scale = jnp.array([[10.0, 10.0, 1.0, 1.0]], jnp.float32)
    offset = jnp.array([[0.0, 0.0, 1.0, 1.0]], jnp.float32)
    return (
        w1.astype(jnp.bfloat16), b1.astype(jnp.float32),
        w2.astype(jnp.bfloat16), b2.astype(jnp.float32),
        wo_f.astype(jnp.bfloat16), bo_f.astype(jnp.float32),
        scale, offset,
    )


def rlcar_forward(x, params, *, tb=4096):
    w1, b1, w2, b2, wo, bo, scale, offset = prepare_params(params)
    B, d_in = x.shape

    # Pad batch only to a multiple of 16 (bf16 sublane packing); Pallas masks
    # any ragged last block via pl.cdiv on the grid.
    Bp = _round_up(B, 16)
    tb_eff = max(16, min((tb // 16) * 16, Bp))
    grid = pl.cdiv(Bp, tb_eff)

    xb = x.astype(jnp.bfloat16)
    if Bp != B:
        xb = jnp.pad(xb, ((0, Bp - B), (0, 0)))

    out = pl.pallas_call(
        rlcar_kernel,
        out_shape=jax.ShapeDtypeStruct((Bp, 4), jnp.float32),
        grid=(grid,),
        in_specs=[
            pl.BlockSpec((tb_eff, d_in), lambda i: (i, 0)),   # streamed x tiles
            pl.BlockSpec(w1.shape, lambda i: (0, 0)),          # VMEM-resident weights
            pl.BlockSpec(b1.shape, lambda i: (0, 0)),
            pl.BlockSpec(w2.shape, lambda i: (0, 0)),
            pl.BlockSpec(b2.shape, lambda i: (0, 0)),
            pl.BlockSpec(wo.shape, lambda i: (0, 0)),
            pl.BlockSpec(bo.shape, lambda i: (0, 0)),
            pl.BlockSpec(scale.shape, lambda i: (0, 0)),
            pl.BlockSpec(offset.shape, lambda i: (0, 0)),
        ],
        out_specs=pl.BlockSpec((tb_eff, 4), lambda i: (i, 0)),
        compiler_params=pltpu.CompilerParams(
            dimension_semantics=("parallel",),      # v7x: shard steps over both TCs
            vmem_limit_bytes=32 * 1024 * 1024,
        ),
    )(xb, w1, b1, w2, b2, wo, bo, scale, offset)

    return out[:B]


def init_params(key, input_size):
    # Deterministic synthetic parameters (shapes match the nn.Linear layers,
    # stored pre-transposed as [D_in, D_out]).
    d_in = input_size + 2
    k1, k2, k3, k4, k5, k6 = jax.random.split(key, 6)
    w1 = jax.random.normal(k1, (d_in, 64), jnp.float32) * (1.0 / jnp.sqrt(d_in))
    b1 = jax.random.normal(k2, (1, 64), jnp.float32) * 0.01
    w2 = jax.random.normal(k3, (64, 16), jnp.float32) * (1.0 / 8.0)
    b2 = jax.random.normal(k4, (1, 16), jnp.float32) * 0.01
    wo = jax.random.normal(k5, (16, 4), jnp.float32) * 0.25
    bo = jax.random.normal(k6, (1, 4), jnp.float32) * 0.01
    # TODO(synk): fc3 (16 -> 16) exists in the PyTorch __init__ but is unused
    # in forward, so it is not materialized here.
    return (w1, b1, w2, b2, wo, bo)


def rlcar_reference(x, params):
    # Pure-JAX reference with the same bf16 quantization the kernel applies.
    w1, b1, w2, b2, wo, bo = params
    xq = x.astype(jnp.bfloat16)
    w1q, w2q, woq = (w1.astype(jnp.bfloat16), w2.astype(jnp.bfloat16),
                     wo.astype(jnp.bfloat16))
    h1 = jnp.maximum(jnp.dot(xq, w1q, preferred_element_type=jnp.float32) + b1, 0.0)
    h2 = jnp.maximum(
        jnp.dot(h1.astype(jnp.bfloat16), w2q, preferred_element_type=jnp.float32) + b2,
        0.0)
    z = jnp.dot(h2.astype(jnp.bfloat16), woq, preferred_element_type=jnp.float32) + bo
    return jnp.concatenate(
        [jnp.tanh(z[:, :2]) * 10.0, jax.nn.sigmoid(z[:, 2:]) * 2.0], axis=1
    )


if __name__ == "__main__":
    input_size = 30          # fc1 takes input_size + 2 = 32 features
    batch = 8

    key = jax.random.PRNGKey(0)
    kx, kp = jax.random.split(key)
    x = jax.random.normal(kx, (batch, input_size + 2), jnp.float32)
    params = init_params(kp, input_size)

    out = rlcar_forward(x, params)
    out = jax.block_until_ready(out)

    ref = rlcar_reference(x, params)
    assert out.shape == (batch, 4), out.shape
    assert jnp.allclose(out, ref, atol=1e-3, rtol=1e-3), (
        jnp.max(jnp.abs(out - ref))
    )

    print("KERNEL_OK")
</pallas_src>

<mosaic_0001>
module attributes {stable_mosaic.version = 11 : i64} {
  func.func @rlcar_kernel(%arg0: i32, %arg1: memref<16x32xbf16, #tpu.memory_space<vmem>>, %arg2: memref<32x64xbf16, #tpu.memory_space<vmem>>, %arg3: memref<1x64xf32, #tpu.memory_space<vmem>>, %arg4: memref<64x16xbf16, #tpu.memory_space<vmem>>, %arg5: memref<1x16xf32, #tpu.memory_space<vmem>>, %arg6: memref<16x4xbf16, #tpu.memory_space<vmem>>, %arg7: memref<1x4xf32, #tpu.memory_space<vmem>>, %arg8: memref<1x4xf32, #tpu.memory_space<vmem>>, %arg9: memref<1x4xf32, #tpu.memory_space<vmem>>, %arg10: memref<16x4xf32, #tpu.memory_space<vmem>>) attributes {dimension_semantics = [#tpu.dimension_semantics<parallel>], iteration_bounds = array<i64: 1>, scalar_prefetch = 0 : i64, scratch_operands = 0 : i64, tpu.core_type = #tpu.core_type<tc>, window_params = [{transform_indices = @transform_0, window_bounds = array<i64: 16, 32>}, {pipeline_mode = #tpu.pipeline_mode<synchronous>, transform_indices = @transform_1, window_bounds = array<i64: 32, 64>}, {pipeline_mode = #tpu.pipeline_mode<synchronous>, transform_indices = @transform_2, window_bounds = array<i64: 1, 64>}, {pipeline_mode = #tpu.pipeline_mode<synchronous>, transform_indices = @transform_3, window_bounds = array<i64: 64, 16>}, {pipeline_mode = #tpu.pipeline_mode<synchronous>, transform_indices = @transform_4, window_bounds = array<i64: 1, 16>}, {pipeline_mode = #tpu.pipeline_mode<synchronous>, transform_indices = @transform_5, window_bounds = array<i64: 16, 4>}, {pipeline_mode = #tpu.pipeline_mode<synchronous>, transform_indices = @transform_6, window_bounds = array<i64: 1, 4>}, {pipeline_mode = #tpu.pipeline_mode<synchronous>, transform_indices = @transform_7, window_bounds = array<i64: 1, 4>}, {pipeline_mode = #tpu.pipeline_mode<synchronous>, transform_indices = @transform_8, window_bounds = array<i64: 1, 4>}, {transform_indices = @transform_9, window_bounds = array<i64: 16, 4>}]} {
    %c0 = arith.constant 0 : index
    %c0_0 = arith.constant 0 : index
    %0 = vector.load %arg1[%c0, %c0_0] : memref<16x32xbf16, #tpu.memory_space<vmem>>, vector<16x32xbf16>
    %c0_1 = arith.constant 0 : index
    %c0_2 = arith.constant 0 : index
    %1 = vector.load %arg2[%c0_1, %c0_2] : memref<32x64xbf16, #tpu.memory_space<vmem>>, vector<32x64xbf16>
    %cst = arith.constant dense<0.000000e+00> : vector<16x64xf32>
    %2 = tpu.matmul %0, %1, %cst {dimension_numbers = #tpu.dot_dimension_numbers<[1], [0], [0], [1], [0, 0, 1, 1], [], []>} : vector<16x32xbf16>, vector<32x64xbf16>, vector<16x64xf32> -> vector<16x64xf32>
    %c0_3 = arith.constant 0 : index
    %c0_4 = arith.constant 0 : index
    %3 = vector.load %arg3[%c0_3, %c0_4] : memref<1x64xf32, #tpu.memory_space<vmem>>, vector<1x64xf32>
    %4 = vector.broadcast %3 : vector<1x64xf32> to vector<16x64xf32>
    %5 = arith.addf %2, %4 : vector<16x64xf32>
    %cst_5 = arith.constant 0.000000e+00 : f32
    %6 = vector.broadcast %cst_5 : f32 to vector<16x64xf32>
    %7 = arith.maximumf %5, %6 : vector<16x64xf32>
    %8 = arith.truncf %7 : vector<16x64xf32> to vector<16x64xbf16>
    %c0_6 = arith.constant 0 : index
    %c0_7 = arith.constant 0 : index
    %9 = vector.load %arg4[%c0_6, %c0_7] : memref<64x16xbf16, #tpu.memory_space<vmem>>, vector<64x16xbf16>
    %cst_8 = arith.constant dense<0.000000e+00> : vector<16x16xf32>
    %10 = tpu.matmul %8, %9, %cst_8 {dimension_numbers = #tpu.dot_dimension_numbers<[1], [0], [0], [1], [0, 0, 1, 1], [], []>} : vector<16x64xbf16>, vector<64x16xbf16>, vector<16x16xf32> -> vector<16x16xf32>
    %c0_9 = arith.constant 0 : index
    %c0_10 = arith.constant 0 : index
    %11 = vector.load %arg5[%c0_9, %c0_10] : memref<1x16xf32, #tpu.memory_space<vmem>>, vector<1x16xf32>
    %12 = vector.broadcast %11 : vector<1x16xf32> to vector<16x16xf32>
    %13 = arith.addf %10, %12 : vector<16x16xf32>
    %cst_11 = arith.constant 0.000000e+00 : f32
    %14 = vector.broadcast %cst_11 : f32 to vector<16x16xf32>
    %15 = arith.maximumf %13, %14 : vector<16x16xf32>
    %16 = arith.truncf %15 : vector<16x16xf32> to vector<16x16xbf16>
    %c0_12 = arith.constant 0 : index
    %c0_13 = arith.constant 0 : index
    %17 = vector.load %arg6[%c0_12, %c0_13] : memref<16x4xbf16, #tpu.memory_space<vmem>>, vector<16x4xbf16>
    %cst_14 = arith.constant dense<0.000000e+00> : vector<16x4xf32>
    %18 = tpu.matmul %16, %17, %cst_14 {dimension_numbers = #tpu.dot_dimension_numbers<[1], [0], [0], [1], [0, 0, 1, 1], [], []>} : vector<16x16xbf16>, vector<16x4xbf16>, vector<16x4xf32> -> vector<16x4xf32>
    %c0_15 = arith.constant 0 : index
    %c0_16 = arith.constant 0 : index
    %19 = vector.load %arg7[%c0_15, %c0_16] : memref<1x4xf32, #tpu.memory_space<vmem>>, vector<1x4xf32>
    %20 = vector.broadcast %19 : vector<1x4xf32> to vector<16x4xf32>
    %21 = arith.addf %18, %20 : vector<16x4xf32>
    %c0_17 = arith.constant 0 : index
    %c0_18 = arith.constant 0 : index
    %22 = vector.load %arg8[%c0_17, %c0_18] : memref<1x4xf32, #tpu.memory_space<vmem>>, vector<1x4xf32>
    %23 = math.tanh %21 : vector<16x4xf32>
    %24 = vector.broadcast %22 : vector<1x4xf32> to vector<16x4xf32>
    %25 = arith.mulf %24, %23 : vector<16x4xf32>
    %c0_19 = arith.constant 0 : index
    %c0_20 = arith.constant 0 : index
    %26 = vector.load %arg9[%c0_19, %c0_20] : memref<1x4xf32, #tpu.memory_space<vmem>>, vector<1x4xf32>
    %27 = vector.broadcast %26 : vector<1x4xf32> to vector<16x4xf32>
    %28 = arith.addf %25, %27 : vector<16x4xf32>
    %c0_21 = arith.constant 0 : index
    %c0_22 = arith.constant 0 : index
    %29 = vector.load %arg10[%c0_21, %c0_22] : memref<16x4xf32, #tpu.memory_space<vmem>>, vector<16x4xf32>
    tpu.vector_store %arg10[%c0_21, %c0_22], %28 {strides = array<i32>} : memref<16x4xf32, #tpu.memory_space<vmem>>, vector<16x4xf32>,
    return
  }
  func.func @transform_0(%arg0: i32) -> (i32, i32) {
    %c0_i32 = arith.constant 0 : i32
    %c0_i32_0 = arith.constant 0 : i32
    return %arg0, %c0_i32 : i32, i32
  }
  func.func @transform_1(%arg0: i32) -> (i32, i32) {
    %c0_i32 = arith.constant 0 : i32
    %c0_i32_0 = arith.constant 0 : i32
    %c0_i32_1 = arith.constant 0 : i32
    return %c0_i32, %c0_i32_0 : i32, i32
  }
  func.func @transform_2(%arg0: i32) -> (i32, i32) {
    %c0_i32 = arith.constant 0 : i32
    %c0_i32_0 = arith.constant 0 : i32
    %c0_i32_1 = arith.constant 0 : i32
    return %c0_i32, %c0_i32_0 : i32, i32
  }
  func.func @transform_3(%arg0: i32) -> (i32, i32) {
    %c0_i32 = arith.constant 0 : i32
    %c0_i32_0 = arith.constant 0 : i32
    %c0_i32_1 = arith.constant 0 : i32
    return %c0_i32, %c0_i32_0 : i32, i32
  }
  func.func @transform_4(%arg0: i32) -> (i32, i32) {
    %c0_i32 = arith.constant 0 : i32
    %c0_i32_0 = arith.constant 0 : i32
    %c0_i32_1 = arith.constant 0 : i32
    return %c0_i32, %c0_i32_0 : i32, i32
  }
  func.func @transform_5(%arg0: i32) -> (i32, i32) {
    %c0_i32 = arith.constant 0 : i32
    %c0_i32_0 = arith.constant 0 : i32
    %c0_i32_1 = arith.constant 0 : i32
    return %c0_i32, %c0_i32_0 : i32, i32
  }
  func.func @transform_6(%arg0: i32) -> (i32, i32) {
    %c0_i32 = arith.constant 0 : i32
    %c0_i32_0 = arith.constant 0 : i32
    %c0_i32_1 = arith.constant 0 : i32
    return %c0_i32, %c0_i32_0 : i32, i32
  }
  func.func @transform_7(%arg0: i32) -> (i32, i32) {
    %c0_i32 = arith.constant 0 : i32
    %c0_i32_0 = arith.constant 0 : i32
    %c0_i32_1 = arith.constant 0 : i32
    return %c0_i32, %c0_i32_0 : i32, i32
  }
  func.func @transform_8(%arg0: i32) -> (i32, i32) {
    %c0_i32 = arith.constant 0 : i32
    %c0_i32_0 = arith.constant 0 : i32
    %c0_i32_1 = arith.constant 0 : i32
    return %c0_i32, %c0_i32_0 : i32, i32
  }
  func.func @transform_9(%arg0: i32) -> (i32, i32) {
    %c0_i32 = arith.constant 0 : i32
    %c0_i32_0 = arith.constant 0 : i32
    return %arg0, %c0_i32 : i32, i32
  }
}

</mosaic_0001>

<bundles_post_ra>
// kernel: tpu_custom_call.1
= control target key start
LH: loop header
LB: loop body
LE: loop exit
PB: predicated region body
PF: predicated region fallthrough
CT: control target
= control target key end

     0   :  { %vm60_vm0 = vcmask 261120   ;;  %vm117_vm1 = vcmask 523264   ;;  %vm150_vm2 = vcmask 130048   ;;  %vm182_vm3 = vcmask 31744   ;;  %s336_s1 = inlined_call_operand.vmem [shape: bf16[32,64], index: 1, kind: input, shape index: {}]   ;;  %s337_s2 = inlined_call_operand.vmem [shape: f32[1,64], index: 2, kind: input, shape index: {}]   ;;  %s338_s0 = inlined_call_operand.vmem [shape: bf16[16,32], index: 0, kind: input, shape index: {}]   ;;  %s339_s4 = inlined_call_operand.vmem [shape: f32[1,16], index: 4, kind: input, shape index: {}]   ;;  %s340_s3 = inlined_call_operand.vmem [shape: bf16[64,16], index: 3, kind: input, shape index: {}]   ;;  %s341_s6 = inlined_call_operand.vmem [shape: f32[1,4], index: 6, kind: input, shape index: {}]   ;;  %s342_s7 = inlined_call_operand.vmem [shape: f32[1,4], index: 7, kind: input, shape index: {}]   ;;  %s343_s8 = inlined_call_operand.vmem [shape: f32[1,4], index: 8, kind: input, shape index: {}]   ;;  %s344_s5 = inlined_call_operand.vmem [shape: bf16[16,4], index: 5, kind: input, shape index: {}]   ;;  %s345_s9 = inlined_call_operand.vmem [shape: f32[16,4], index: 9, kind: output, shape index: {}]  }
   0x1   :  { %v226_v0 = vld [vmem:[%s336_s1 + $0x8] sm:$0xff]  ;;  %v225_v1 = vld [vmem:[%s336_s1] sm:$0xff]  ;;  %v230_v3 = vld [vmem:[%s340_s3 + $0x18] sm:$0xff] }
   0x2   :  { %70 = vmatpush.bf16.msra.mxu0 %v226_v0  ;;  %v224_v2 = vld [vmem:[%s338_s0] sm:$0xff]  ;;  %125 = vmatpush.bf16.msra.mxu1 %v230_v3  ;;  %v229_v4 = vld [vmem:[%s340_s3 + $0x10] sm:$0xff]  ;;  %v228_v5 = vld [vmem:[%s340_s3 + $0x8] sm:$0xff] }
   0x3   :  { %v227_v6 = vld [vmem:[%s340_s3] sm:$0xff] }
   0x4   :  { %v232_v8 = vld [vmem:[%s337_s2] ss:$0 sm:$0xff] }
   0x5   :  { %v231_v15 = vld [vmem:[%s344_s5] sm:$0xff] }
   0x6   :  { %71 = vmatpush.bf16.msra.mxu0 %v225_v1  ;;  %126 = vmatpush.bf16.msra.mxu1 %v229_v4  ;;  %v233_v17 = vld [vmem:[%s339_s4] ss:$0 sm:$0xff] }
   0x7   :  { %161 = vmatpush.bf16.msra.mxu2 %v231_v15  ;;  %v234_v24 = vld [vmem:[%s341_s6] ss:$0 sm:$0xff] }
   0x8   :  { %v235_v27 = vld [vmem:[%s342_s7] ss:$0 sm:$0xff] }
   0x9   :  { %201 = vmatmul.msk.bf16.vlgmr.msra.gmra.mxu0 %vm60_vm0, %v224_v2  ;;  %v236_v28 = vld [vmem:[%s343_s8] ss:$0 sm:$0xff] }
   0xa   :  { %127 = vmatpush.bf16.msra.mxu1 %v228_v5 }
   0xe   :  { %128 = vmatpush.bf16.msra.mxu1 %v227_v6 }
  0x86   :  { %v73_v7 = vpop.f32.mrf.mxu0 }
  0x87   :  { %v74_v9 = vadd.f32 %v232_v8, %v73_v7 }
  0x89   :  { %v78_v12 = vmax.f32 %v74_v9, 0.0 }
  0x8e   :  { %v75_v10 = vpop.f32.mrf.mxu0 }
  0x8f   :  { %v76_v11 = vadd.f32 %v232_v8, %v75_v10 }
  0x91   :  { %v79_v13 = vmax.f32 %v76_v11, 0.0 }
  0x93   :  { %v80_v14 = vpack.c.bf16 %v79_v13, %v78_v12 }
  0x95   :  { %218 = vmatmul.msk.bf16.vlgmr.msra.gmra.mxu1 %vm117_vm1, %v80_v14 }
 0x112   :  { %v130_v16 = vpop.f32.mrf.mxu1 }
 0x113   :  { %v131_v18 = vadd.f32 %v233_v17, %v130_v16 }
 0x115   :  { %v135_v21 = vmax.f32 %v131_v18, 0.0 }
 0x11a   :  { %v132_v19 = vpop.f32.mrf.mxu1 }
 0x11b   :  { %v133_v20 = vadd.f32 %v233_v17, %v132_v19 }
 0x11d   :  { %v136_v22 = vmax.f32 %v133_v20, 0.0 }
 0x11f   :  { %v137_v23 = vpack.c.bf16 %v136_v22, %v135_v21 }
 0x121   :  { %223 = vmatmul.msk.bf16.vlgmr.msra.gmra.mxu2 %vm150_vm2, %v137_v23 }
 0x1a4   :  { %v163_v25 = vpop.f32.mrf.mxu2 }
 0x1a5   :  { %v164_v26 = vadd.f32 %v234_v24, %v163_v25 }
 0x1a7   :  { %237 = vtanh.f32 %v164_v26 }
 0x1ac   :  { %v165_v29 = vpop.f32.mrf.mxu2 }
 0x1ad   :  { %v238_v30 = vpop.eup %237  ;;  %v166_v31 = vadd.f32 %v234_v24, %v165_v29 }
 0x1ae   :  { %v174_v32 = vmul.f32 %v238_v30, %v235_v27 }
 0x1af   :  { %239 = vtanh.f32 %v166_v31 }
 0x1b0   :  { %v180_v33 = vadd.f32 %v236_v28, %v174_v32 }
 0x1b2   :  { %183 = vst.msk [vmem:[%s345_s9] sm:$0xff] %vm182_vm3, %v180_v33 }
 0x1b5   :  { %v240_v34 = vpop.eup %239 }
 0x1b6   :  { %v175_v35 = vmul.f32 %v240_v34, %v235_v27 }
 0x1b8   :  { %v181_v36 = vadd.f32 %v236_v28, %v175_v35 }
 0x1ba   :  { %184 = vst.msk [vmem:[%s345_s9 + $0x8] sm:$0xff] %vm182_vm3, %v181_v36 }

</bundles_post_ra>
